<compile_context>
chip_gen: v5e
topology: v5e:2x2
jax: 0.10.0
libtpu: 0.0.40
codegen_flags: <defaults>
</compile_context>

<pallas_src>
import jax
import jax.numpy as jnp
from jax.experimental import pallas as pl
from jax.experimental.pallas import tpu as pltpu


def _mse_norm_kernel(x_ref, y_ref, o_ref):
    # x_ref / y_ref: (Bn, C, T_HW) tiles in native dtype; upcast per-tile.
    x = x_ref[...].astype(jnp.float32)
    y = y_ref[...].astype(jnp.float32)

    big = jnp.float32(1e12)  # == 1 / eps with eps = 1e-12 (F.normalize default)
    inv_x = jnp.minimum(jax.lax.rsqrt(jnp.sum(x * x, axis=1, keepdims=True)), big)
    inv_y = jnp.minimum(jax.lax.rsqrt(jnp.sum(y * y, axis=1, keepdims=True)), big)

    d = x * inv_x - y * inv_y
    # Independent per-grid-step partial sum (no accumulator residency).
    o_ref[...] = jnp.full((1, 1, 1, 1), jnp.sum(d * d), dtype=jnp.float32)


def _round_up(a, b):
    return -(-a // b) * b


def mse_norm_loss(x_nchw, y_nchw):
    """x, y: (N, C, H, W) arrays (any float dtype). Returns scalar f32 loss."""
    assert x_nchw.shape == y_nchw.shape
    N, C, H, W = x_nchw.shape
    HW = H * W
    total = N * C * H * W
    itemsize = jnp.dtype(x_nchw.dtype).itemsize

    # Keep native dtype (kernel upcasts per tile) -> no extra HBM traffic.
    x3 = x_nchw.reshape(N, C, HW)
    y3 = y_nchw.reshape(N, C, HW)

    LANE = 128
    # Sublane padding of the channel axis in VMEM (8 f32 / 16 bf16 / 32 int8).
    sub_mult = {4: 8, 2: 16, 1: 32}.get(itemsize, 8)
    c_pad = _round_up(C, sub_mult)

    # --- Lane (H*W) tile: multiple of 128, ~<=1 MiB of f32 work per sample,
    #     preferring a divisor of the 128-padded extent (avoids extra padding).
    hw_128 = _round_up(HW, LANE)
    cap = max(LANE, min(2048, ((1 << 20) // (c_pad * 4)) // LANE * LANE, hw_128))
    t_hw = LANE
    t = cap
    while t >= LANE:
        if hw_128 % t == 0:
            t_hw = t
            break
        t -= LANE
    hw_pad = hw_128

    if hw_pad != HW:
        # Zero padding is numerically safe: all-zero lane columns contribute 0
        # to both the channel norms and the squared differences; the mean
        # below divides by the ORIGINAL element count.
        pad = ((0, 0), (0, 0), (0, hw_pad - HW))
        x3 = jnp.pad(x3, pad)
        y3 = jnp.pad(y3, pad)

    # --- Batch block: pack samples until a step carries ~1 MiB of f32 work
    #     (amortizes per-grid-step overhead); shrink to a divisor of N so no
    #     batch padding is ever needed.
    per_sample_f32 = c_pad * t_hw * 4
    bn = max(1, min(N, (1 << 20) // per_sample_f32))
    while N % bn != 0:
        bn -= 1

    gn = N // bn
    gh = hw_pad // t_hw

    cost = pl.CostEstimate(
        flops=10 * total,
        transcendentals=2 * N * HW,
        bytes_accessed=2 * N * C * HW * itemsize + gn * gh * 4,
    )

    partials = pl.pallas_call(
        _mse_norm_kernel,
        out_shape=jax.ShapeDtypeStruct((gn, gh, 1, 1), jnp.float32),
        grid_spec=pltpu.PrefetchScalarGridSpec(
            num_scalar_prefetch=0,
            grid=(gn, gh),
            in_specs=[
                pl.BlockSpec((bn, C, t_hw), lambda nb, hb: (nb, 0, hb)),
                pl.BlockSpec((bn, C, t_hw), lambda nb, hb: (nb, 0, hb)),
            ],
            # Last two block dims equal the full array extents (1,1), so the
            # (8,128) alignment rule is satisfied for any grid size.
            out_specs=pl.BlockSpec((1, 1, 1, 1), lambda nb, hb: (nb, hb, 0, 0)),
        ),
        compiler_params=pltpu.CompilerParams(
            dimension_semantics=("parallel", "parallel"),
            vmem_limit_bytes=32 * 1024 * 1024,  # sized for v7x; fine on v5e/v6e
        ),
        cost_estimate=cost,
    )(x3, y3)

    # Tiny finalization outside the kernel: sum of per-block partials / count.
    return jnp.sum(partials) / jnp.float32(total)


def _reference(x, y):
    eps = 1e-12
    xn = x / jnp.maximum(jnp.sqrt(jnp.sum(x * x, axis=1, keepdims=True)), eps)
    yn = y / jnp.maximum(jnp.sqrt(jnp.sum(y * y, axis=1, keepdims=True)), eps)
    return jnp.mean((xn - yn) ** 2)


if __name__ == "__main__":
    key = jax.random.PRNGKey(0)
    kx, ky = jax.random.split(key)
    N, C, H, W = 2, 4, 16, 16
    x = jax.random.normal(kx, (N, C, H, W), dtype=jnp.float32)
    y = jax.random.normal(ky, (N, C, H, W), dtype=jnp.float32)

    loss = jax.block_until_ready(mse_norm_loss(x, y))
    ref = jax.block_until_ready(_reference(x, y))

    assert jnp.allclose(loss, ref, rtol=1e-5, atol=1e-6), (loss, ref)
    print("KERNEL_OK")
</pallas_src>

<mosaic_0001>
module attributes {stable_mosaic.version = 11 : i64} {
  func.func @_mse_norm_kernel(%arg0: i32, %arg1: i32, %arg2: memref<2x4x256xf32, #tpu.memory_space<vmem>>, %arg3: memref<2x4x256xf32, #tpu.memory_space<vmem>>, %arg4: memref<1x1x1x1xf32, #tpu.memory_space<vmem>>) attributes {dimension_semantics = [#tpu.dimension_semantics<parallel>, #tpu.dimension_semantics<parallel>], iteration_bounds = array<i64: 1, 1>, scalar_prefetch = 0 : i64, scratch_operands = 0 : i64, tpu.core_type = #tpu.core_type<tc>, window_params = [{transform_indices = @transform_0, window_bounds = array<i64: 2, 4, 256>}, {transform_indices = @transform_1, window_bounds = array<i64: 2, 4, 256>}, {transform_indices = @transform_2, window_bounds = array<i64: 1, 1, 1, 1>}]} {
    %c0 = arith.constant 0 : index
    %c0_0 = arith.constant 0 : index
    %c0_1 = arith.constant 0 : index
    %0 = vector.load %arg2[%c0, %c0_0, %c0_1] : memref<2x4x256xf32, #tpu.memory_space<vmem>>, vector<2x4x256xf32>
    %c0_2 = arith.constant 0 : index
    %c0_3 = arith.constant 0 : index
    %c0_4 = arith.constant 0 : index
    %1 = vector.load %arg3[%c0_2, %c0_3, %c0_4] : memref<2x4x256xf32, #tpu.memory_space<vmem>>, vector<2x4x256xf32>
    %2 = arith.mulf %0, %0 : vector<2x4x256xf32>
    %cst = arith.constant dense<0.000000e+00> : vector<2x256xf32>
    %3 = vector.multi_reduction <add>, %2, %cst [1] : vector<2x4x256xf32> to vector<2x256xf32>
    %4 = vector.shape_cast %3 : vector<2x256xf32> to vector<2x1x256xf32>
    %5 = math.rsqrt %4 : vector<2x1x256xf32>
    %cst_5 = arith.constant 9.99999995E+11 : f32
    %6 = vector.broadcast %cst_5 : f32 to vector<2x1x256xf32>
    %7 = arith.minimumf %5, %6 : vector<2x1x256xf32>
    %8 = arith.mulf %1, %1 : vector<2x4x256xf32>
    %cst_6 = arith.constant dense<0.000000e+00> : vector<2x256xf32>
    %9 = vector.multi_reduction <add>, %8, %cst_6 [1] : vector<2x4x256xf32> to vector<2x256xf32>
    %10 = vector.shape_cast %9 : vector<2x256xf32> to vector<2x1x256xf32>
    %11 = math.rsqrt %10 : vector<2x1x256xf32>
    %cst_7 = arith.constant 9.99999995E+11 : f32
    %12 = vector.broadcast %cst_7 : f32 to vector<2x1x256xf32>
    %13 = arith.minimumf %11, %12 : vector<2x1x256xf32>
    %14 = vector.broadcast %7 : vector<2x1x256xf32> to vector<2x4x256xf32>
    %15 = arith.mulf %0, %14 : vector<2x4x256xf32>
    %16 = vector.broadcast %13 : vector<2x1x256xf32> to vector<2x4x256xf32>
    %17 = arith.mulf %1, %16 : vector<2x4x256xf32>
    %18 = arith.subf %15, %17 : vector<2x4x256xf32>
    %19 = arith.mulf %18, %18 : vector<2x4x256xf32>
    %20 = vector.shape_cast %19 : vector<2x4x256xf32> to vector<1x2x4x256xf32>
    %cst_8 = arith.constant dense<0.000000e+00> : vector<1xf32>
    %21 = vector.multi_reduction <add>, %20, %cst_8 [1, 2, 3] : vector<1x2x4x256xf32> to vector<1xf32>
    %22 = vector.shape_cast %21 : vector<1xf32> to vector<1x1x1x1xf32>
    %23 = vector.extract %22[0, 0, 0, 0] : f32 from vector<1x1x1x1xf32>
    %24 = vector.broadcast %23 : f32 to vector<1x1x1x1xf32>
    %c0_9 = arith.constant 0 : index
    %c0_10 = arith.constant 0 : index
    %c0_11 = arith.constant 0 : index
    %c0_12 = arith.constant 0 : index
    %25 = vector.load %arg4[%c0_9, %c0_10, %c0_11, %c0_12] : memref<1x1x1x1xf32, #tpu.memory_space<vmem>>, vector<1x1x1x1xf32>
    tpu.vector_store %arg4[%c0_9, %c0_10, %c0_11, %c0_12], %24 {strides = array<i32>} : memref<1x1x1x1xf32, #tpu.memory_space<vmem>>, vector<1x1x1x1xf32>,
    return
  }
  func.func @transform_0(%arg0: i32, %arg1: i32) -> (i32, i32, i32) {
    %c0_i32 = arith.constant 0 : i32
    %c0_i32_0 = arith.constant 0 : i32
    return %arg0, %c0_i32, %arg1 : i32, i32, i32
  }
  func.func @transform_1(%arg0: i32, %arg1: i32) -> (i32, i32, i32) {
    %c0_i32 = arith.constant 0 : i32
    %c0_i32_0 = arith.constant 0 : i32
    return %arg0, %c0_i32, %arg1 : i32, i32, i32
  }
  func.func @transform_2(%arg0: i32, %arg1: i32) -> (i32, i32, i32, i32) {
    %c0_i32 = arith.constant 0 : i32
    %c0_i32_0 = arith.constant 0 : i32
    %c0_i32_1 = arith.constant 0 : i32
    return %arg0, %arg1, %c0_i32, %c0_i32_0 : i32, i32, i32, i32
  }
}

</mosaic_0001>

<bundles_post_ra>
// kernel: tpu_custom_call.1
= control target key start
LH: loop header
LB: loop body
LE: loop exit
PB: predicated region body
PF: predicated region fallthrough
CT: control target
= control target key end

     0   :  { %7 = vsyncpa [#allocation3], 0  ;;  %s578_s0 = inlined_call_operand.hbm [shape: f32[2,4,256], index: 0, kind: input, shape index: {}]   ;;  %s579_s1 = inlined_call_operand.hbm [shape: f32[2,4,256], index: 1, kind: input, shape index: {}]   ;;  %s580_s2 = inlined_call_operand.hbm [shape: f32[1,1,1,1], index: 2, kind: output, shape index: {}]  }
   0x1   :  { %8 = vsyncpa [#allocation6], 0 }
   0x2   :  { %9 = vsyncpa [#allocation4], 0  ;;  %s14_s11 = sshll.u32 %s578_s0, 4  ;;  %s402_s12 = smov [#allocation2]   ;;  %s15_s11 = int_to_ptr.hbm [resolvable:$true] %s14_s11 }
   0x3   :  { %s16_s13 = sshll.u32 %s402_s12, 4  ;;  %s27_s16 = sshll.u32 %s579_s1, 4  ;;  %s17_s13 = int_to_ptr.vmem [resolvable:$true] %s16_s13  ;;  %s28_s16 = int_to_ptr.hbm [resolvable:$true] %s27_s16 }
   0x4   :  { %s403_s17 = smov 128   ;;  %s404_s18 = smov 8  }
   0x5   :  { %22 = dma.hbm_to_vmem [thread:$0]  %s15_s11, 256, %s17_s13, [#allocation3], %s403_s17, %s403_s17, %s404_s18  }
   0x6   :  { %s405_s19 = smov [#allocation5]  }
   0x7   :  { %s29_s20 = sshll.u32 %s405_s19, 4  ;;  %s30_s20 = int_to_ptr.vmem [resolvable:$true] %s29_s20 }
   0x8   :  { %35 = dma.hbm_to_vmem [thread:$0]  %s28_s16, 256, %s30_s20, [#allocation6], %s403_s17, %s403_s17, %s404_s18  }
   0x9   :  { %396 = dma.done.wait [#allocation3], 256  }
   0xa   :  { %397 = vsyncadd [#allocation3], 4294967040 }
   0xb   :  { %398 = dma.done.wait [#allocation6], 256  }
   0xc   :  { %399 = vsyncadd [#allocation6], 4294967040  ;;  %v428_v0 = vld [vmem:[#allocation2] sm:$0xff]  ;;  %v430_v1 = vld [vmem:[#allocation2 + $0x8] sm:$0xff]  ;;  %vm63_vm0 = vcmask 1043456   ;;  %s406_s0 = smov [#allocation7]  }
   0xd   :  { %v48_v2 = vmul.f32 %v428_v0, %v428_v0  ;;  %v49_v3 = vmul.f32 %v430_v1, %v430_v1  ;;  %v436_v4 = vld [vmem:[#allocation5] sm:$0xff]  ;;  %v438_v5 = vld [vmem:[#allocation5 + $0x8] sm:$0xff]  ;;  %s288_s1 = sshll.u32 %s406_s0, 4  ;;  %s290_s23 = sshll.u32 %s580_s2, 4  ;;  %s289_s1 = int_to_ptr.vmem [resolvable:$true] %s288_s1  ;;  %s291_s23 = int_to_ptr.hbm [resolvable:$true] %s290_s23 }
   0xe   :  { %v136_v6 = vmul.f32 %v436_v4, %v436_v4  ;;  %v137_v7 = vmul.f32 %v438_v5, %v438_v5 }
   0xf   :  { %52 = vst [vmem:[#allocation1] ss:$2 sm:$0xff] %v48_v2 }
  0x10   :  { %56 = vst [vmem:[#allocation1 + $0x10] ss:$2 sm:$0xff] %v49_v3 }
  0x16   :  { %v53_v8 = vld.sshfl [vmem:[#allocation1] sm:$0xff pattern:$0x75316420]  ;;  %v54_v9 = vld.sshfl [vmem:[#allocation1 + $0x8] sm:$0xff pattern:$0x75316420] }
  0x17   :  { %v57_v10 = vld.sshfl [vmem:[#allocation1 + $0x10] sm:$0xff pattern:$0x75316420]  ;;  %v58_v11 = vld.sshfl [vmem:[#allocation1 + $0x18] sm:$0xff pattern:$0x75316420] }
  0x18   :  { %v64_v12 = vsel %vm63_vm0, %v53_v8, 0.0  ;;  %v71_v13 = vsel %vm63_vm0, %v54_v9, 0.0  ;;  %v78_v14 = vsel %vm63_vm0, %v57_v10, 0.0  ;;  %v85_v15 = vsel %vm63_vm0, %v58_v11, 0.0  ;;  %140 = vst [vmem:[#allocation1] ss:$2 sm:$0xff] %v136_v6 }
  0x19   :  { %v65_v16 = vrot.slane %v64_v12, 4  ;;  %v72_v17 = vrot.slane %v71_v13, 4  ;;  %v79_v18 = vrot.slane %v78_v14, 4  ;;  %v86_v19 = vrot.slane %v85_v15, 4  ;;  %144 = vst [vmem:[#allocation1 + $0x10] ss:$2 sm:$0xff] %v137_v7 }
  0x1b   :  { %v66_v20 = vadd.f32 %v65_v16, %v64_v12  ;;  %v73_v21 = vadd.f32 %v72_v17, %v71_v13  ;;  %v80_v22 = vadd.f32 %v79_v18, %v78_v14  ;;  %v87_v23 = vadd.f32 %v86_v19, %v85_v15 }
  0x1d   :  { %v67_v24 = vrot.slane %v66_v20, 2  ;;  %v74_v25 = vrot.slane %v73_v21, 2  ;;  %v81_v26 = vrot.slane %v80_v22, 2  ;;  %v88_v27 = vrot.slane %v87_v23, 2 }
  0x1f   :  { %v68_v28 = vadd.f32 %v67_v24, %v66_v20  ;;  %v75_v29 = vadd.f32 %v74_v25, %v73_v21  ;;  %v82_v30 = vadd.f32 %v81_v26, %v80_v22  ;;  %v89_v31 = vadd.f32 %v88_v27, %v87_v23  ;;  %v141_v32 = vld.sshfl [vmem:[#allocation1] sm:$0xff pattern:$0x75316420]  ;;  %v142_v33 = vld.sshfl [vmem:[#allocation1 + $0x8] sm:$0xff pattern:$0x75316420] }
  0x20   :  { %v145_v34 = vld.sshfl [vmem:[#allocation1 + $0x10] sm:$0xff pattern:$0x75316420]  ;;  %v146_v35 = vld.sshfl [vmem:[#allocation1 + $0x18] sm:$0xff pattern:$0x75316420] }
  0x21   :  { %v69_v36 = vrot.slane %v68_v28, 1  ;;  %v76_v37 = vrot.slane %v75_v29, 1  ;;  %v83_v38 = vrot.slane %v82_v30, 1  ;;  %v90_v39 = vrot.slane %v89_v31, 1 }
  0x22   :  { %v151_v40 = vsel %vm63_vm0, %v141_v32, 0.0  ;;  %v158_v41 = vsel %vm63_vm0, %v142_v33, 0.0  ;;  %v165_v42 = vsel %vm63_vm0, %v145_v34, 0.0  ;;  %v172_v43 = vsel %vm63_vm0, %v146_v35, 0.0 }
  0x23   :  { %v452_v44 = vadd.f32 %v69_v36, %v68_v28  ;;  %v77_v45 = vadd.f32 %v76_v37, %v75_v29  ;;  %v454_v46 = vadd.f32 %v83_v38, %v82_v30  ;;  %v456_v47 = vadd.f32 %v90_v39, %v89_v31 }
  0x24   :  { %v152_v48 = vrot.slane %v151_v40, 4  ;;  %v159_v49 = vrot.slane %v158_v41, 4  ;;  %v166_v50 = vrot.slane %v165_v42, 4  ;;  %v173_v51 = vrot.slane %v172_v43, 4 }
  0x25   :  { %308 = vrsqrt.f32 %v452_v44  ;;  %vm108_vm1 = vweird.f32 %v77_v45  ;;  %vm128_vm3 = vweird.f32 %v456_v47  ;;  %vm98_vm6 = vweird.f32 %v452_v44 }
  0x26   :  { %310 = vrsqrt.f32 %v77_v45  ;;  %v153_v52 = vadd.f32 %v152_v48, %v151_v40  ;;  %v160_v53 = vadd.f32 %v159_v49, %v158_v41  ;;  %v167_v54 = vadd.f32 %v166_v50, %v165_v42 }
  0x27   :  { %312 = vrsqrt.f32 %v454_v46  ;;  %v174_v55 = vadd.f32 %v173_v51, %v172_v43  ;;  %vm118_vm8 = vweird.f32 %v454_v46 }
  0x28   :  { %314 = vrsqrt.f32 %v456_v47  ;;  %v154_v56 = vrot.slane %v153_v52, 2  ;;  %v161_v57 = vrot.slane %v160_v53, 2  ;;  %v168_v58 = vrot.slane %v167_v54, 2 }
  0x29   :  { %v175_v59 = vrot.slane %v174_v55, 2 }
  0x2a   :  { %v155_v60 = vadd.f32 %v154_v56, %v153_v52  ;;  %v162_v61 = vadd.f32 %v161_v57, %v160_v53  ;;  %v169_v63 = vadd.f32 %v168_v58, %v167_v54 }
  0x2b   :  { %v461_v62 = vpop.eup %308  ;;  %v176_v2 = vadd.f32 %v175_v59, %v174_v55 }
  0x2c   :  { %v463_v3 = vpop.eup %310  ;;  %v93_v6 = vmul.f32 %v461_v62, %v452_v44  ;;  %v156_v7 = vrot.slane %v155_v60, 1  ;;  %v163_v8 = vrot.slane %v162_v61, 1  ;;  %v170_v11 = vrot.slane %v169_v63, 1 }
  0x2d   :  { %v467_v9 = vpop.eup %312  ;;  %v103_v10 = vmul.f32 %v463_v3, %v77_v45  ;;  %v177_v12 = vrot.slane %v176_v2, 1  ;;  %vm109_vm2 = vweird.f32 %v463_v3  ;;  %vm99_vm7 = vweird.f32 %v461_v62 }
  0x2e   :  { %v470_v13 = vpop.eup %314  ;;  %v94_v14 = vmul.f32 %v461_v62, %v93_v6  ;;  %v113_v15 = vmul.f32 %v467_v9, %v454_v46  ;;  %v475_v16 = vadd.f32 %v156_v7, %v155_v60  ;;  %v480_v19 = vadd.f32 %v163_v8, %v162_v61  ;;  %vm496_vm5 = vmor %vm108_vm1, %vm109_vm2 }
  0x2f   :  { %v104_v17 = vmul.f32 %v463_v3, %v103_v10  ;;  %v123_v18 = vmul.f32 %v470_v13, %v456_v47  ;;  %v483_v21 = vadd.f32 %v170_v11, %v169_v63  ;;  %v485_v22 = vadd.f32 %v177_v12, %v176_v2  ;;  %vm523_vm13 = vmor %vm98_vm6, %vm99_vm7 }
  0x30   :  { %v114_v20 = vmul.f32 %v467_v9, %v113_v15  ;;  %v95_v23 = vmul.f32 0.5, %v94_v14  ;;  %316 = vrsqrt.f32 %v475_v16  ;;  %vm129_vm4 = vweird.f32 %v470_v13 }
  0x31   :  { %v105_v24 = vmul.f32 0.5, %v104_v17  ;;  %v124_v25 = vmul.f32 %v470_v13, %v123_v18  ;;  %318 = vrsqrt.f32 %v480_v19  ;;  %vm119_vm9 = vweird.f32 %v467_v9  ;;  %vm507_vm10 = vmor %vm128_vm3, %vm129_vm4 }
  0x32   :  { %v115_v27 = vmul.f32 0.5, %v114_v20  ;;  %320 = vrsqrt.f32 %v483_v21  ;;  %v96_v29 = vsub.f32 1.5, %v95_v23  ;;  %vm185_vm11 = vweird.f32 %v475_v16  ;;  %vm539_vm1 = vmor %vm118_vm8, %vm119_vm9 }
  0x33   :  { %v106_v26 = vsub.f32 1.5, %v105_v24  ;;  %v125_v28 = vmul.f32 0.5, %v124_v25  ;;  %322 = vrsqrt.f32 %v485_v22  ;;  %vm195_vm12 = vweird.f32 %v480_v19 }
  0x34   :  { %v116_v34 = vsub.f32 1.5, %v115_v27  ;;  %v97_v40 = vmul.f32 %v461_v62, %v96_v29  ;;  %vm205_vm14 = vweird.f32 %v483_v21  ;;  %vm215_vm15 = vweird.f32 %v485_v22 }
  0x35   :  { %v107_v30 = vmul.f32 %v463_v3, %v106_v26  ;;  %v126_v31 = vsub.f32 1.5, %v125_v28 }
  0x36   :  { %v317_v33 = vpop.eup %316  ;;  %v117_v49 = vmul.f32 %v467_v9, %v116_v34  ;;  %v101_v56 = vsel %vm523_vm13, %v461_v62, %v97_v40 }
  0x37   :  { %v127_v35 = vmul.f32 %v470_v13, %v126_v31  ;;  %v319_v36 = vpop.eup %318  ;;  %v180_v38 = vmul.f32 %v317_v33, %v475_v16  ;;  %v111_v41 = vsel %vm496_vm5, %v463_v3, %v107_v30  ;;  %vm186_vm2 = vweird.f32 %v317_v33 }
  0x38   :  { %v321_v39 = vpop.eup %320  ;;  %v190_v42 = vmul.f32 %v319_v36, %v480_v19  ;;  %v133_v53 = vmin.f32 %v111_v41, 1e+12  ;;  %vm196_vm3 = vweird.f32 %v319_v36  ;;  %v121_v46 = vsel %vm539_vm1, %v467_v9, %v117_v49  ;;  %vm551_vm5 = vmor %vm185_vm11, %vm186_vm2 }
  0x39   :  { %v323_v43 = vpop.eup %322  ;;  %v181_v47 = vmul.f32 %v317_v33, %v180_v38  ;;  %v200_v48 = vmul.f32 %v321_v39, %v483_v21  ;;  %v131_v50 = vsel %vm507_vm10, %v470_v13, %v127_v35  ;;  %vm206_vm4 = vweird.f32 %v321_v39  ;;  %vm197_vm7 = vmor %vm195_vm12, %vm196_vm3 }
  0x3a   :  { %v191_v51 = vmul.f32 %v319_v36, %v190_v42  ;;  %v210_v44 = vmul.f32 %v323_v43, %v485_v22  ;;  %v135_v59 = vmin.f32 %v131_v50, 1e+12  ;;  %vm216_vm6 = vweird.f32 %v323_v43  ;;  %vm207_vm8 = vmor %vm205_vm14, %vm206_vm4 }
  0x3b   :  { %v182_v54 = vmul.f32 0.5, %v181_v47  ;;  %v201_v55 = vmul.f32 %v321_v39, %v200_v48  ;;  %v132_v62 = vmin.f32 %v101_v56, 1e+12  ;;  %v227_v8 = vrot.slane %v133_v53, 4  ;;  %vm217_vm9 = vmor %vm215_vm15, %vm216_vm6 }
  0x3c   :  { %v192_v57 = vmul.f32 0.5, %v191_v51  ;;  %v211_v58 = vmul.f32 %v323_v43, %v210_v44  ;;  %v134_v11 = vmin.f32 %v121_v46, 1e+12  ;;  %v228_v14 = vrot.slane %v135_v59, 4 }
  0x3d   :  { %v183_v60 = vsub.f32 1.5, %v182_v54  ;;  %v202_v61 = vmul.f32 0.5, %v201_v55  ;;  %v229_v20 = vsel %vm63_vm0, %v132_v62, %v227_v8  ;;  %vm281_vm10 = vcmask 0  }
  0x3e   :  { %v193_v2 = vsub.f32 1.5, %v192_v57  ;;  %v212_v3 = vmul.f32 0.5, %v211_v58  ;;  %v230_v25 = vsel %vm63_vm0, %v134_v11, %v228_v14  ;;  %v233_v27 = vmul.f32 %v229_v20, %v428_v0 }
  0x3f   :  { %v184_v6 = vmul.f32 %v317_v33, %v183_v60  ;;  %v203_v7 = vsub.f32 1.5, %v202_v61  ;;  %v234_v29 = vmul.f32 %v230_v25, %v430_v1 }
  0x40   :  { %v194_v10 = vmul.f32 %v319_v36, %v193_v2  ;;  %v213_v9 = vsub.f32 1.5, %v212_v3 }
  0x41   :  { %v188_v12 = vsel %vm551_vm5, %v317_v33, %v184_v6  ;;  %v204_v13 = vmul.f32 %v321_v39, %v203_v7 }
  0x42   :  { %v198_v15 = vsel %vm197_vm7, %v319_v36, %v194_v10  ;;  %v214_v16 = vmul.f32 %v323_v43, %v213_v9  ;;  %v219_v18 = vmin.f32 %v188_v12, 1e+12 }
  0x43   :  { %v208_v17 = vsel %vm207_vm8, %v321_v39, %v204_v13  ;;  %v220_v19 = vmin.f32 %v198_v15, 1e+12 }
  0x44   :  { %v218_v23 = vsel %vm217_vm9, %v323_v43, %v214_v16  ;;  %v221_v21 = vmin.f32 %v208_v17, 1e+12 }
  0x45   :  { %v222_v24 = vmin.f32 %v218_v23, 1e+12  ;;  %v239_v26 = vrot.slane %v220_v19, 4 }
  0x47   :  { %v240_v28 = vrot.slane %v222_v24, 4  ;;  %v241_v22 = vsel %vm63_vm0, %v219_v18, %v239_v26 }
  0x48   :  { %v245_v30 = vmul.f32 %v241_v22, %v436_v4 }
  0x49   :  { %v242_v31 = vsel %vm63_vm0, %v221_v21, %v240_v28 }
  0x4a   :  { %v246_v32 = vmul.f32 %v242_v31, %v438_v5  ;;  %v247_v33 = vsub.f32 %v233_v27, %v245_v30 }
  0x4c   :  { %v248_v34 = vsub.f32 %v234_v29, %v246_v32  ;;  %v249_v35 = vmul.f32 %v247_v33, %v247_v33 }
  0x4e   :  { %v250_v36 = vmul.f32 %v248_v34, %v248_v34  ;;  %253 = vst [vmem:[#allocation1] ss:$2 sm:$0xff] %v249_v35 }
  0x50   :  { %257 = vst [vmem:[#allocation1 + $0x10] ss:$2 sm:$0xff] %v250_v36 }
  0x55   :  { %v254_v37 = vld.sshfl [vmem:[#allocation1] sm:$0xff pattern:$0x75316420]  ;;  %v255_v38 = vld.sshfl [vmem:[#allocation1 + $0x8] sm:$0xff pattern:$0x75316420] }
  0x56   :  { %v264_v0 = vsel %vm63_vm0, %v254_v37, 0.0  ;;  %v265_v39 = vsel %vm63_vm0, %v255_v38, 0.0 }
  0x57   :  { %v258_v40 = vld.sshfl [vmem:[#allocation1 + $0x10] sm:$0xff pattern:$0x75316420]  ;;  %v259_v1 = vld.sshfl [vmem:[#allocation1 + $0x18] sm:$0xff pattern:$0x75316420]  ;;  %v266_v41 = vadd.f32 %v265_v39, %v264_v0 }
  0x58   :  { %v267_v4 = vsel %vm63_vm0, %v258_v40, 0.0  ;;  %v269_v42 = vsel %vm63_vm0, %v259_v1, 0.0 }
  0x59   :  { %v268_v5 = vadd.f32 %v267_v4, %v266_v41 }
  0x5b   :  { %v270_v43 = vadd.f32 %v269_v42, %v268_v5 }
  0x5d   :  { %271 = vadd.xlane.f32.xlu0 %v270_v43 }
  0xd0   :  { %v272_v45 = vpop.xlane.xlu0 %271 }
  0xd1   :  { %v273_v47 = vrot.slane %v272_v45, 4 }
  0xd3   :  { %v274_v48 = vadd.f32 %v273_v47, %v272_v45 }
  0xd5   :  { %v275_v49 = vrot.slane %v274_v48, 2 }
  0xd7   :  { %v276_v50 = vadd.f32 %v275_v49, %v274_v48 }
  0xd9   :  { %v277_v51 = vrot.slane %v276_v50, 1 }
  0xdb   :  { %v278_v44 = vadd.f32 %v277_v51, %v276_v50 }
  0xdd   :  { %301 = vpush %v278_v44 }
 0x10e   :  { %s302_s24 = spop %301 }
 0x10f   :  { %v280_v52 = vstv %s302_s24 }
 0x110   :  { %282 = vst.msk [vmem:[#allocation7] sm:$0x1] %vm281_vm10, %v280_v52 }
 0x111   :  { %293 = dma.vmem_to_hbm [thread:$0]  %s289_s1, 16, %s291_s23, [#allocation4]  }
 0x112   :  { %400 = dma.done.wait [#allocation4], 16  }
 0x113   :  { %401 = vsyncadd [#allocation4], 4294967280 }
 0x114   :  { %298 = vsyncpa [#allocation3], 1 }
 0x115   :  { %299 = vsyncpa [#allocation6], 1 }
 0x116   :  { %300 = vsyncpa [#allocation4], 1 }

</bundles_post_ra>
